<compile_context>
chip_gen: v7x
topology: tpu7x:2x2x1
jax: 0.10.0
libtpu: 0.0.40
codegen_flags: <defaults>
</compile_context>

<pallas_src>
import functools
import math

import jax
import jax.numpy as jnp
from jax import lax
from jax.experimental import pallas as pl
from jax.experimental.pallas import tpu as pltpu

_LANES = 128
_SUBLANES = 8
_NSTATS = 5          # policy, value, entropy, kl, clip-indicator partial sums
_STAT_ROWS = 8       # sublane-padded accumulator rows (rows 5..7 stay zero)


def _cdiv(a, b):
    return -(-a // b)


def _round_up(x, m):
    return _cdiv(x, m) * m


def _adv_stats_kernel(adv_ref, out_ref, acc_ref, shift_ref, *, n_elems,
                      tile_rows, mask_from_block, num_blocks):
    """One pass over advantages -> (2,) SMEM output [mean, 1/(std+1e-8)].

    Shifted (first-tile-mean) sum / sum-of-squares accumulated lane-wide in a
    VMEM accumulator; cross-lane reduce + mean / inv-std epilogue run once in
    the final grid step.  ddof=1 matches torch.Tensor.std().
    """
    pid = pl.program_id(0)

    def accumulate(masked):
        a = adv_ref[...].astype(jnp.float32)
        if masked:
            row0 = pid * tile_rows
            r = lax.broadcasted_iota(jnp.int32, a.shape, 0) + row0
            c = lax.broadcasted_iota(jnp.int32, a.shape, 1)
            mask = (r * _LANES + c) < n_elems
            a = jnp.where(mask, a, 0.0)

        @pl.when(pid == 0)
        def _():
            denom = float(n_elems) if masked else float(a.size)
            shift_ref[0] = jnp.sum(a) / denom
            acc_ref[...] = jnp.zeros_like(acc_ref)

        shift = shift_ref[0]
        d = a - shift
        if masked:
            d = jnp.where(mask, d, 0.0)
        acc_ref[0, :] += jnp.sum(d, axis=0)
        acc_ref[1, :] += jnp.sum(d * d, axis=0)

        @pl.when(pid == num_blocks - 1)
        def _():
            n = float(n_elems)
            s1 = jnp.sum(acc_ref[0, :])
            s2 = jnp.sum(acc_ref[1, :])
            mean = shift_ref[0] + s1 / n
            var = (s2 - s1 * s1 / n) / (n - 1.0)   # NaN for n==1, like torch
            out_ref[0] = mean
            out_ref[1] = 1.0 / (jnp.sqrt(jnp.maximum(var, 0.0)) + 1e-8)

    if mask_from_block >= num_blocks:
        accumulate(False)
    elif mask_from_block <= 0:
        accumulate(True)
    else:
        @pl.when(pid < mask_from_block)
        def _():
            accumulate(False)

        @pl.when(pid >= mask_from_block)
        def _():
            accumulate(True)


def _ppo_main_kernel(*refs, clip_epsilon, value_clip_epsilon,
                     normalize_advantages, has_weights, n_elems, tile_rows,
                     mask_from_block, num_blocks):
    refs = list(refs)
    stats_ref = refs.pop(0) if normalize_advantages else None
    out_ref = refs.pop()
    lp_ref, olp_ref, adv_ref, v_ref, ov_ref, ret_ref, ent_ref = refs[:7]
    w_ref = refs[7] if has_weights else None

    c = pl.program_id(0)
    s = pl.program_id(1)
    block_idx = c * pl.num_programs(1) + s

    @pl.when(s == 0)
    def _():
        out_ref[...] = jnp.zeros_like(out_ref)

    def accumulate(masked):
        lp = lp_ref[...].astype(jnp.float32)
        olp = olp_ref[...].astype(jnp.float32)
        adv = adv_ref[...].astype(jnp.float32)
        v = v_ref[...].astype(jnp.float32)
        ov = ov_ref[...].astype(jnp.float32)
        ret = ret_ref[...].astype(jnp.float32)
        ent = ent_ref[...].astype(jnp.float32)

        delta = lp - olp                    # == log(ratio), no exp->log trip
        ratio = jnp.exp(delta)

        if normalize_advantages:
            adv = (adv - stats_ref[0]) * stats_ref[1]

        surr1 = ratio * adv
        surr2 = jnp.clip(ratio, 1.0 - clip_epsilon, 1.0 + clip_epsilon) * adv
        policy_loss = -jnp.minimum(surr1, surr2)

        if value_clip_epsilon is not None:
            v_clipped = ov + jnp.clip(v - ov, -value_clip_epsilon,
                                      value_clip_epsilon)
            value_loss = jnp.maximum((v - ret) ** 2, (v_clipped - ret) ** 2)
        else:
            value_loss = (v - ret) ** 2

        entropy_loss = -ent

        if has_weights:
            w = w_ref[...].astype(jnp.float32)
            policy_loss = policy_loss * w
            value_loss = value_loss * w
            entropy_loss = entropy_loss * w

        kl_term = ratio - 1.0 - delta
        clip_ind = (jnp.abs(ratio - 1.0) > clip_epsilon).astype(jnp.float32)

        terms = [policy_loss, value_loss, entropy_loss, kl_term, clip_ind]
        if masked:
            # Only the last real block (ragged tail / partial block) and any
            # core-split overhang blocks run this path.
            row0 = block_idx * tile_rows
            r = lax.broadcasted_iota(jnp.int32, lp.shape, 0) + row0
            col = lax.broadcasted_iota(jnp.int32, lp.shape, 1)
            mask = (r * _LANES + col) < n_elems
            terms = [jnp.where(mask, t, 0.0) for t in terms]

        # Lane-wide partial sums (VALU) into the VMEM-resident output block;
        # the cross-lane reduce happens once, in the XLA epilogue.
        for i, t in enumerate(terms):
            out_ref[i, :] += jnp.sum(t, axis=0)

    if mask_from_block >= num_blocks:
        accumulate(False)
    elif mask_from_block <= 0:
        accumulate(True)
    else:
        @pl.when(block_idx < mask_from_block)
        def _():
            accumulate(False)

        @pl.when(block_idx >= mask_from_block)
        def _():
            accumulate(True)


def ppo_loss(log_probs, old_log_probs, advantages, values, old_values,
             returns, entropy, importance_weights=None, *,
             clip_epsilon=0.2, value_clip_epsilon=0.2, entropy_coef=0.01,
             value_loss_coef=0.5, normalize_advantages=True,
             max_tile_rows=2048, num_core_splits=2):
    """Pallas-backed PPOLoss.forward. Returns a dict of scalar losses."""
    n_elems = int(math.prod(log_probs.shape))
    if n_elems == 0:
        raise ValueError("PPO loss requires at least one element.")

    has_weights = importance_weights is not None
    tensors = [log_probs, old_log_probs, advantages, values, old_values,
               returns, entropy]
    if has_weights:
        tensors.append(importance_weights)
    # TODO(synk): importance_weights must have the same shape as the other
    # inputs (no torch-style broadcasting).

    rows = _cdiv(n_elems, _LANES)
    padded = rows * _LANES

    def prep(x):
        flat = jnp.ravel(x)
        if padded != n_elems:          # only ragged inputs pay a copy
            flat = jnp.pad(flat, (0, padded - n_elems))
        return flat.reshape(rows, _LANES)

    tensors = [prep(t) for t in tensors]

    # Sub-32-bit inputs (bf16 / int8) tile as (16,128)/(32,128): align rows.
    min_isz = min(jnp.dtype(t.dtype).itemsize for t in tensors)
    row_align = _SUBLANES * max(1, 4 // max(1, min_isz))

    if rows <= max_tile_rows:
        tile_rows = rows               # single block == full array dims
    else:
        tile_rows = _round_up(max_tile_rows, row_align)
    num_row_blocks = _cdiv(rows, tile_rows)

    splits = (int(num_core_splits)
              if num_row_blocks >= int(num_core_splits) > 1 else 1)
    steps = _cdiv(num_row_blocks, splits)
    num_blocks = splits * steps
    ragged = (padded != n_elems) or (rows % tile_rows != 0)
    mask_from_block = (num_row_blocks - 1) if ragged else num_row_blocks

    pipeline_bytes = sum(2 * tile_rows * _LANES * jnp.dtype(t.dtype).itemsize
                         for t in tensors)
    vmem_limit = int(min(max(32 << 20, pipeline_bytes * 3 // 2), 56 << 20))

    in_specs, args = [], []
    if normalize_advantages:
        adv_isz = jnp.dtype(tensors[2].dtype).itemsize
        stats_align = _SUBLANES * max(1, 4 // max(1, adv_isz))
        stats_max = 2 * max_tile_rows        # single-input pass -> bigger tile
        stats_tile = (rows if rows <= stats_max
                      else _round_up(stats_max, stats_align))
        stats_blocks = _cdiv(rows, stats_tile)
        stats_ragged = (padded != n_elems) or (rows % stats_tile != 0)
        stats_mask_from = (stats_blocks - 1) if stats_ragged else stats_blocks

        stats = pl.pallas_call(
            functools.partial(_adv_stats_kernel, n_elems=n_elems,
                              tile_rows=stats_tile,
                              mask_from_block=stats_mask_from,
                              num_blocks=stats_blocks),
            out_shape=jax.ShapeDtypeStruct((2,), jnp.float32),
            grid=(stats_blocks,),
            in_specs=[pl.BlockSpec((stats_tile, _LANES), lambda i: (i, 0))],
            out_specs=pl.BlockSpec(memory_space=pltpu.SMEM),
            scratch_shapes=[pltpu.VMEM((_STAT_ROWS, _LANES), jnp.float32),
                            pltpu.SMEM((1,), jnp.float32)],
            compiler_params=pltpu.CompilerParams(
                dimension_semantics=("arbitrary",),
                vmem_limit_bytes=32 << 20),
        )(tensors[2])
        in_specs.append(pl.BlockSpec(memory_space=pltpu.SMEM))
        args.append(stats)

    last_block = num_row_blocks - 1

    def row_block_index(c, s):
        # Clamp: overhang steps of the core-split axis re-read the last block
        # (their contribution is masked to zero inside the kernel).
        return (jnp.minimum(c * steps + s, last_block), 0)

    tile_spec = pl.BlockSpec((tile_rows, _LANES), row_block_index)
    in_specs.extend([tile_spec] * len(tensors))
    args.extend(tensors)

    partials = pl.pallas_call(
        functools.partial(
            _ppo_main_kernel,
            clip_epsilon=float(clip_epsilon),
            value_clip_epsilon=(None if value_clip_epsilon is None
                                else float(value_clip_epsilon)),
            normalize_advantages=bool(normalize_advantages),
            has_weights=has_weights,
            n_elems=n_elems,
            tile_rows=tile_rows,
            mask_from_block=mask_from_block,
            num_blocks=num_blocks),
        out_shape=jax.ShapeDtypeStruct((splits, _STAT_ROWS, _LANES),
                                       jnp.float32),
        grid=(splits, steps),
        in_specs=in_specs,
        out_specs=pl.BlockSpec((None, _STAT_ROWS, _LANES),
                               lambda c, s: (c, 0, 0)),
        compiler_params=pltpu.CompilerParams(
            dimension_semantics=("parallel", "arbitrary"),
            vmem_limit_bytes=vmem_limit),
    )(*args)

    # Tiny XLA epilogue: cross-core + cross-lane reduce and normalization.
    sums = jnp.sum(partials[:, :_NSTATS, :], axis=(0, 2)) / jnp.float32(n_elems)
    policy_m, value_m, entropy_m, kl_m, clip_m = (sums[0], sums[1], sums[2],
                                                  sums[3], sums[4])
    total = policy_m + value_loss_coef * value_m + entropy_coef * entropy_m
    return {
        "total_loss": total,
        "policy_loss": policy_m,
        "value_loss": value_m,
        "entropy_loss": entropy_m,
        "approx_kl": kl_m,
        "clip_fraction": clip_m,
    }


def _ppo_loss_ref(lp, olp, adv, v, ov, ret, ent, w=None, *,
                  clip_epsilon=0.2, value_clip_epsilon=0.2, entropy_coef=0.01,
                  value_loss_coef=0.5, normalize_advantages=True):
    """Pure-JAX reference mirroring the PyTorch module (compute in f32)."""
    lp, olp, adv, v, ov, ret, ent = (x.astype(jnp.float32)
                                     for x in (lp, olp, adv, v, ov, ret, ent))
    if w is not None:
        w = w.astype(jnp.float32)
    if normalize_advantages:
        mean = adv.mean()
        std = jnp.sqrt(jnp.sum((adv - mean) ** 2) / (adv.size - 1))
        adv = (adv - mean) / (std + 1e-8)
    ratio = jnp.exp(lp - olp)
    surr1 = ratio * adv
    surr2 = jnp.clip(ratio, 1 - clip_epsilon, 1 + clip_epsilon) * adv
    policy_loss = -jnp.minimum(surr1, surr2)
    if value_clip_epsilon is not None:
        v_clip = ov + jnp.clip(v - ov, -value_clip_epsilon, value_clip_epsilon)
        value_loss = jnp.maximum((v - ret) ** 2, (v_clip - ret) ** 2)
    else:
        value_loss = (v - ret) ** 2
    entropy_loss = -ent
    if w is not None:
        policy_loss, value_loss, entropy_loss = (
            policy_loss * w, value_loss * w, entropy_loss * w)
    total = (policy_loss.mean() + value_loss_coef * value_loss.mean()
             + entropy_coef * entropy_loss.mean())
    return {
        "total_loss": total,
        "policy_loss": policy_loss.mean(),
        "value_loss": value_loss.mean(),
        "entropy_loss": entropy_loss.mean(),
        "approx_kl": (ratio - 1 - jnp.log(ratio)).mean(),
        "clip_fraction": (jnp.abs(ratio - 1) > clip_epsilon).astype(
            jnp.float32).mean(),
    }


if __name__ == "__main__":
    key = jax.random.PRNGKey(0)

    def make_inputs(shape, with_weights, k, dtype=jnp.float32):
        ks = jax.random.split(k, 8)
        olp = -jnp.abs(jax.random.normal(ks[0], shape, jnp.float32)) - 0.1
        lp = olp + 0.1 * jax.random.normal(ks[1], shape, jnp.float32)
        adv = jax.random.normal(ks[2], shape, jnp.float32)
        ov = jax.random.normal(ks[3], shape, jnp.float32)
        v = ov + 0.3 * jax.random.normal(ks[4], shape, jnp.float32)
        ret = jax.random.normal(ks[5], shape, jnp.float32)
        ent = jnp.abs(jax.random.normal(ks[6], shape, jnp.float32))
        w = (jnp.abs(jax.random.normal(ks[7], shape, jnp.float32))
             if with_weights else None)
        xs = [x.astype(dtype) for x in (lp, olp, adv, v, ov, ret, ent)]
        if w is not None:
            w = w.astype(dtype)
        return (*xs, w)

    cases = [
        # (shape, with_weights, dtype, ppo_loss kwargs)
        ((8, 128), False, jnp.float32, {}),                 # aligned, 1 block
        ((5, 37), False, jnp.float32, {}),                  # ragged -> masked
        ((8, 128), True, jnp.float32,
         dict(value_clip_epsilon=None, normalize_advantages=False)),
        ((35, 128), False, jnp.bfloat16,                    # multi-block, core
         dict(max_tile_rows=16, num_core_splits=2)),        # split + overhang
    ]

    for idx, (shape, with_w, dtype, kwargs) in enumerate(cases):
        k = jax.random.fold_in(key, idx)
        lp, olp, adv, v, ov, ret, ent, w = make_inputs(shape, with_w, k, dtype)
        out = ppo_loss(lp, olp, adv, v, ov, ret, ent,
                       importance_weights=w, **kwargs)
        out = jax.tree_util.tree_map(jax.block_until_ready, out)
        ref_kwargs = {kk: vv for kk, vv in kwargs.items()
                      if kk in ("clip_epsilon", "value_clip_epsilon",
                                "entropy_coef", "value_loss_coef",
                                "normalize_advantages")}
        ref = _ppo_loss_ref(lp, olp, adv, v, ov, ret, ent, w, **ref_kwargs)
        for name in out:
            assert jnp.allclose(out[name], ref[name], rtol=1e-4, atol=1e-5), (
                idx, name, out[name], ref[name])

    print("KERNEL_OK")
</pallas_src>

<mosaic_0001>
module attributes {stable_mosaic.version = 11 : i64} {
  func.func @_adv_stats_kernel(%arg0: i32, %arg1: memref<8x128xf32, #tpu.memory_space<vmem>>, %arg2: memref<2xf32, #tpu.memory_space<smem>>, %arg3: memref<8x128xf32, #tpu.memory_space<vmem>>, %arg4: memref<1xf32, #tpu.memory_space<smem>>) attributes {dimension_semantics = [#tpu.dimension_semantics<arbitrary>], iteration_bounds = array<i64: 1>, scalar_prefetch = 0 : i64, scratch_operands = 2 : i64, tpu.core_type = #tpu.core_type<tc>, window_params = [{transform_indices = @transform_0, window_bounds = array<i64: 8, 128>}, {transform_indices = @transform_1, window_bounds = array<i64: 2>}]} {
    %c0 = arith.constant 0 : index
    %c0_0 = arith.constant 0 : index
    %0 = vector.load %arg1[%c0, %c0_0] : memref<8x128xf32, #tpu.memory_space<vmem>>, vector<8x128xf32>
    %c0_i32 = arith.constant 0 : i32
    %1 = arith.cmpi eq, %arg0, %c0_i32 : i32
    %2 = arith.extui %1 : i1 to i32
    %c0_i32_1 = arith.constant 0 : i32
    %3 = arith.cmpi ne, %2, %c0_i32_1 : i32
    scf.if %3 {
      %25 = vector.shape_cast %0 : vector<8x128xf32> to vector<1x8x128xf32>
      %cst_13 = arith.constant dense<0.000000e+00> : vector<1xf32>
      %26 = vector.multi_reduction <add>, %25, %cst_13 [1, 2] : vector<1x8x128xf32> to vector<1xf32>
      %27 = vector.shape_cast %26 : vector<1xf32> to vector<1x1x1xf32>
      %28 = vector.extract %27[0, 0, 0] : f32 from vector<1x1x1xf32>
      %cst_14 = arith.constant 1.024000e+03 : f32
      %29 = arith.divf %28, %cst_14 : f32
      %c0_15 = arith.constant 0 : index
      %30 = memref.load %arg4[%c0_15] : memref<1xf32, #tpu.memory_space<smem>>
      memref.store %29, %arg4[%c0_15] : memref<1xf32, #tpu.memory_space<smem>>
      %cst_16 = arith.constant 0.000000e+00 : f32
      %31 = vector.broadcast %cst_16 : f32 to vector<8x128xf32>
      %c0_17 = arith.constant 0 : index
      %c0_18 = arith.constant 0 : index
      %32 = vector.load %arg3[%c0_17, %c0_18] : memref<8x128xf32, #tpu.memory_space<vmem>>, vector<8x128xf32>
      tpu.vector_store %arg3[%c0_17, %c0_18], %31 {strides = array<i32>} : memref<8x128xf32, #tpu.memory_space<vmem>>, vector<8x128xf32>,
    } else {
    }
    %c0_2 = arith.constant 0 : index
    %4 = memref.load %arg4[%c0_2] : memref<1xf32, #tpu.memory_space<smem>>
    %5 = vector.broadcast %4 : f32 to vector<8x128xf32>
    %6 = arith.subf %0, %5 : vector<8x128xf32>
    %c0_3 = arith.constant 0 : index
    %c0_4 = arith.constant 0 : index
    %7 = vector.load %arg3[%c0_3, %c0_4] : memref<8x128xf32, #tpu.memory_space<vmem>>, vector<1x128xf32>
    %8 = vector.shape_cast %7 : vector<1x128xf32> to vector<128xf32>
    %cst = arith.constant dense<0.000000e+00> : vector<128xf32>
    %9 = vector.multi_reduction <add>, %6, %cst [0] : vector<8x128xf32> to vector<128xf32>
    %10 = arith.addf %8, %9 : vector<128xf32>
    %c0_5 = arith.constant 0 : index
    %c0_6 = arith.constant 0 : index
    %11 = vector.load %arg3[%c0_5, %c0_6] : memref<8x128xf32, #tpu.memory_space<vmem>>, vector<1x128xf32>
    %12 = vector.shape_cast %11 : vector<1x128xf32> to vector<128xf32>
    %13 = vector.shape_cast %10 : vector<128xf32> to vector<1x128xf32>
    tpu.vector_store %arg3[%c0_5, %c0_6], %13 {strides = array<i32>} : memref<8x128xf32, #tpu.memory_space<vmem>>, vector<1x128xf32>,
    %c1 = arith.constant 1 : index
    %c0_7 = arith.constant 0 : index
    %14 = vector.load %arg3[%c1, %c0_7] : memref<8x128xf32, #tpu.memory_space<vmem>>, vector<1x128xf32>
    %15 = vector.shape_cast %14 : vector<1x128xf32> to vector<128xf32>
    %16 = arith.mulf %6, %6 : vector<8x128xf32>
    %cst_8 = arith.constant dense<0.000000e+00> : vector<128xf32>
    %17 = vector.multi_reduction <add>, %16, %cst_8 [0] : vector<8x128xf32> to vector<128xf32>
    %18 = arith.addf %15, %17 : vector<128xf32>
    %c1_9 = arith.constant 1 : index
    %c0_10 = arith.constant 0 : index
    %19 = vector.load %arg3[%c1_9, %c0_10] : memref<8x128xf32, #tpu.memory_space<vmem>>, vector<1x128xf32>
    %20 = vector.shape_cast %19 : vector<1x128xf32> to vector<128xf32>
    %21 = vector.shape_cast %18 : vector<128xf32> to vector<1x128xf32>
    tpu.vector_store %arg3[%c1_9, %c0_10], %21 {strides = array<i32>} : memref<8x128xf32, #tpu.memory_space<vmem>>, vector<1x128xf32>,
    %c0_i32_11 = arith.constant 0 : i32
    %22 = arith.cmpi eq, %arg0, %c0_i32_11 : i32
    %23 = arith.extui %22 : i1 to i32
    %c0_i32_12 = arith.constant 0 : i32
    %24 = arith.cmpi ne, %23, %c0_i32_12 : i32
    scf.if %24 {
      %c0_13 = arith.constant 0 : index
      %c0_14 = arith.constant 0 : index
      %25 = vector.load %arg3[%c0_13, %c0_14] : memref<8x128xf32, #tpu.memory_space<vmem>>, vector<1x128xf32>
      %26 = vector.shape_cast %25 : vector<1x128xf32> to vector<128xf32>
      %27 = vector.shape_cast %26 : vector<128xf32> to vector<1x128xf32>
      %cst_15 = arith.constant dense<0.000000e+00> : vector<1xf32>
      %28 = vector.multi_reduction <add>, %27, %cst_15 [1] : vector<1x128xf32> to vector<1xf32>
      %29 = vector.shape_cast %28 : vector<1xf32> to vector<1x1xf32>
      %30 = vector.extract %29[0, 0] : f32 from vector<1x1xf32>
      %c1_16 = arith.constant 1 : index
      %c0_17 = arith.constant 0 : index
      %31 = vector.load %arg3[%c1_16, %c0_17] : memref<8x128xf32, #tpu.memory_space<vmem>>, vector<1x128xf32>
      %32 = vector.shape_cast %31 : vector<1x128xf32> to vector<128xf32>
      %33 = vector.shape_cast %32 : vector<128xf32> to vector<1x128xf32>
      %cst_18 = arith.constant dense<0.000000e+00> : vector<1xf32>
      %34 = vector.multi_reduction <add>, %33, %cst_18 [1] : vector<1x128xf32> to vector<1xf32>
      %35 = vector.shape_cast %34 : vector<1xf32> to vector<1x1xf32>
      %36 = vector.extract %35[0, 0] : f32 from vector<1x1xf32>
      %c0_19 = arith.constant 0 : index
      %37 = memref.load %arg4[%c0_19] : memref<1xf32, #tpu.memory_space<smem>>
      %cst_20 = arith.constant 1.024000e+03 : f32
      %38 = arith.divf %30, %cst_20 : f32
      %39 = arith.addf %37, %38 : f32
      %40 = arith.mulf %30, %30 : f32
      %cst_21 = arith.constant 1.024000e+03 : f32
      %41 = arith.divf %40, %cst_21 : f32
      %42 = arith.subf %36, %41 : f32
      %cst_22 = arith.constant 1.023000e+03 : f32
      %43 = arith.divf %42, %cst_22 : f32
      %c0_23 = arith.constant 0 : index
      %44 = memref.load %arg2[%c0_23] : memref<2xf32, #tpu.memory_space<smem>>
      memref.store %39, %arg2[%c0_23] : memref<2xf32, #tpu.memory_space<smem>>
      %cst_24 = arith.constant 0.000000e+00 : f32
      %45 = arith.maximumf %43, %cst_24 : f32
      %46 = math.sqrt %45 : f32
      %cst_25 = arith.constant 9.99999993E-9 : f32
      %47 = arith.addf %46, %cst_25 : f32
      %cst_26 = arith.constant 1.000000e+00 : f32
      %48 = arith.divf %cst_26, %47 : f32
      %c1_27 = arith.constant 1 : index
      %49 = memref.load %arg2[%c1_27] : memref<2xf32, #tpu.memory_space<smem>>
      memref.store %48, %arg2[%c1_27] : memref<2xf32, #tpu.memory_space<smem>>
    } else {
    }
    return
  }
  func.func @transform_0(%arg0: i32) -> (i32, i32) {
    %c0_i32 = arith.constant 0 : i32
    %c0_i32_0 = arith.constant 0 : i32
    return %arg0, %c0_i32 : i32, i32
  }
  func.func @transform_1(%arg0: i32) -> i32 {
    %c0_i32 = arith.constant 0 : i32
    %c0_i32_0 = arith.constant 0 : i32
    return %c0_i32 : i32
  }
}

</mosaic_0001>

<bundles_post_ra>
// kernel: tpu_custom_call.1
= control target key start
LH: loop header
LB: loop body
LE: loop exit
PB: predicated region body
PF: predicated region fallthrough
CT: control target
= control target key end

     0   :  { %6 = vsyncpa [#allocation5], 0  ;;  %s221_s0 = inlined_call_operand.hbm [shape: f32[8,128], index: 0, kind: input, shape index: {}]   ;;  %s222_s1 = inlined_call_operand.hbm [shape: f32[2], index: 1, kind: output, shape index: {}]  }
   0x1   :  { %7 = vsyncpa [#allocation6], 0  ;;  %s176_s6 = smov [#allocation4]   ;;  %s140_s10 = scalar_lea.hbm %s221_s0, 128 }
   0x2   :  { %s14_s7 = sshll.u32 %s176_s6, 4  ;;  %p141_p0 = scmp.ne.s32.totalorder %s221_s0, %s140_s10  ;;  %s15_s7 = int_to_ptr.vmem [resolvable:$true] %s14_s7 }
   0x3   :  { %p144_p1 = scmp.lt.u32.totalorder %s140_s10, %s221_s0 }
   0x5   :  { %p146_p2 = pnand %p144_p1, %p141_p0 }
   0x7   :  { %149 = shalt.err (!%p146_p2)
}
   0x8   :  { %s150_s15 = scalar_lea.vmem %s15_s7, 128  ;;  %p155_p4 = scmp.lt.s32.totalorder %s15_s7, %s15_s7 }
   0x9   :  { %p151_p3 = scmp.ne.s32.totalorder %s15_s7, %s150_s15  ;;  %p156_p5 = scmp.lt.s32.totalorder %s150_s15, %s150_s15 }
   0xb   :  { %p157_p6 = por %p156_p5, %p155_p4 }
   0xd   :  { %p158_p7 = pnand %p157_p6, %p151_p3 }
   0xf   :  { %161 = shalt.err (!%p158_p7)
}
  0x10   :  { %17 = dma.hbm_to_vmem [thread:$0]  %s221_s0, 128, %s15_s7, [#allocation5]  }
  0x11   :  { %172 = dma.done.wait [#allocation5], 128  }
  0x12   :  { %173 = vsyncadd [#allocation5], 4294967168  ;;  %v21_v0 = vld [vmem:[#allocation4] sm:$0xff]  ;;  %v177_v1 = vmov 0.0   ;;  %vm67_vm0 = vcmask 1040384   ;;  %s178_s27 = smov 0.0  }
  0x13   :  { %26 = vadd.xlane.f32.xlu0 %v21_v0  ;;  %40 = vst [vmem:[#allocation2] sm:$0xff] %v177_v1  ;;  %s162_s5 = scalar_lea.hbm %s222_s1, 16 }
  0x14   :  { %p163_p8 = scmp.ne.s32.totalorder %s222_s1, %s162_s5  ;;  %p166_p9 = scmp.lt.u32.totalorder %s162_s5, %s222_s1 }
  0x16   :  { %p168_p10 = pnand %p166_p9, %p163_p8 }
  0x1a   :  { %v44_v21 = vld [vmem:[#allocation2] sm:$0x1]  ;;  %v53_v24 = vld [vmem:[#allocation2 + $0x1] sm:$0x1] }
  0xa0   :  { %v27_v2 = vpop.xlane.xlu0 %26 }
  0xa1   :  { %v28_v3 = vrot.slane %v27_v2, 4 }
  0xa3   :  { %v29_v4 = vadd.f32 %v28_v3, %v27_v2 }
  0xa5   :  { %v30_v5 = vrot.slane %v29_v4, 2 }
  0xa7   :  { %v31_v6 = vadd.f32 %v30_v5, %v29_v4 }
  0xa9   :  { %v32_v7 = vrot.slane %v31_v6, 1 }
  0xab   :  { %v33_v8 = vadd.f32 %v32_v7, %v31_v6 }
  0xad   :  { %122 = vpush %v33_v8 }
  0xde   :  { %s202_s18 = spop %122 }
  0xdf   :  { %s37_s19 = smul.f32 0.0009765625, %s202_s18 }
  0xe1   :  { %v42_v9 = vstv %s37_s19 }
  0xe2   :  { %v43_v10 = vsub.f32 %v21_v0, %v42_v9 }
  0xe4   :  { %v45_v11 = vrot.slane %v43_v10, 4  ;;  %v54_v12 = vmul.f32 %v43_v10, %v43_v10 }
  0xe6   :  { %v46_v13 = vadd.f32 %v45_v11, %v43_v10  ;;  %v55_v14 = vrot.slane %v54_v12, 4 }
  0xe8   :  { %v47_v15 = vrot.slane %v46_v13, 2  ;;  %v56_v16 = vadd.f32 %v55_v14, %v54_v12 }
  0xea   :  { %v48_v17 = vadd.f32 %v47_v15, %v46_v13  ;;  %v57_v18 = vrot.slane %v56_v16, 2 }
  0xec   :  { %v49_v19 = vrot.slane %v48_v17, 1  ;;  %v58_v20 = vadd.f32 %v57_v18, %v56_v16 }
  0xee   :  { %v50_v22 = vadd.f32 %v49_v19, %v48_v17  ;;  %v59_v23 = vrot.slane %v58_v20, 1 }
  0xf0   :  { %v51_v25 = vadd.f32 %v50_v22, %v44_v21  ;;  %v60_v26 = vadd.f32 %v59_v23, %v58_v20 }
  0xf2   :  { %52 = vst [vmem:[#allocation2] sm:$0x1] %v51_v25  ;;  %v61_v27 = vadd.f32 %v60_v26, %v53_v24 }
  0xf4   :  { %62 = vst [vmem:[#allocation2 + $0x1] sm:$0x1] %v61_v27 }
  0xf9   :  { %v66_v28 = vld [vmem:[#allocation2] sm:$0x1] }
  0xfa   :  { %v68_v29 = vsel %vm67_vm0, %v66_v28, 0.0 }
  0xfb   :  { %69 = vadd.xlane.f32.xlu0 %v68_v29  ;;  %v72_v30 = vld [vmem:[#allocation2 + $0x1] sm:$0x1] }
  0xfc   :  { %v73_v31 = vsel %vm67_vm0, %v72_v30, 0.0 }
  0xfd   :  { %74 = vadd.xlane.f32.xlu1 %v73_v31 }
 0x188   :  { %v70_v32 = vpop.xlane.xlu0 %69 }
 0x189   :  { %124 = vpush %v70_v32 }
 0x18a   :  { %v75_v33 = vpop.xlane.xlu1 %74 }
 0x18b   :  { %126 = vpush %v75_v33 }
 0x1ba   :  { %s125_s0 = spop %124 }
 0x1bb   :  { %s80_s20 = smul.f32 0.0009765625, %s125_s0 }
 0x1bc   :  { %s82_s21 = smul.f32 %s125_s0, %s125_s0  ;;  %s127_s24 = spop %126 }
 0x1bd   :  { %s81_s22 = sadd.f32 %s80_s20, %s37_s19 }
 0x1be   :  { %s85_s23 = smul.f32 0.0009765625, %s82_s21 }
 0x1bf   :  { %91 = sst [smem:[#allocation7]] %s81_s22 }
 0x1c0   :  { %s86_s25 = ssub.f32 %s127_s24, %s85_s23 }
 0x1c2   :  { %s89_s26 = smul.f32 0.0009775171, %s86_s25 }
 0x1c4   :  { %s92_s28 = smax.f32 %s178_s27, %s89_s26 }
 0x1c5   :  { %v93_v34 = vstv %s92_s28 }
 0x1c6   :  { %136 = vrsqrt.f32 %v93_v34  ;;  %vm96_vm1 = vcmp.eq.f32.partialorder %v93_v34, inf  ;;  %v99_v37 = vand.u32 2147483648, %v93_v34  ;;  %vm98_vm2 = vcmp.eq.f32.partialorder %v93_v34, 0.0 }
 0x1d0   :  { %v137_v35 = vpop.eup %136 }
 0x1d1   :  { %v95_v36 = vmul.f32 %v137_v35, %v93_v34 }
 0x1d3   :  { %v97_v38 = vsel %vm96_vm1, %v93_v34, %v95_v36 }
 0x1d4   :  { %v100_v39 = vsel %vm98_vm2, %v99_v37, %v97_v38 }
 0x1d5   :  { %128 = vpush %v100_v39 }
 0x206   :  { %s129_s29 = spop %128 }
 0x207   :  { %s102_s30 = sadd.f32 1e-08, %s129_s29 }
 0x209   :  { %v103_v40 = vstv %s102_s30 }
 0x20a   :  { %138 = vrcp.f32 %v103_v40 }
 0x214   :  { %v139_v41 = vpop.eup %138 }
 0x215   :  { %130 = vpush %v139_v41 }
 0x246   :  { %s131_s2 = spop %130 }
 0x247   :  { %107 = sst [smem:[#allocation7 + $0x1]] %s131_s2 }
 0x248   :  { %171 = shalt.err (!%p168_p10)
}
 0x249   :  { %s179_s10 = smov [#allocation7]  }
 0x24a   :  { %115 = dma.smem_to_hbm %s179_s10, 16, %s222_s1, [#allocation6]  }
 0x24b   :  { %174 = dma.done.wait [#allocation6], 16  }
 0x24c   :  { %175 = vsyncadd [#allocation6], 4294967280 }
 0x24d   :  { %119 = sfence }
 0x24e   :  { %120 = vsyncpa [#allocation5], 1 }
 0x24f   :  { %121 = vsyncpa [#allocation6], 1 }

</bundles_post_ra>
